<compile_context>
chip_gen: v5e
topology: v5e:2x2
jax: 0.10.0
libtpu: 0.0.40
codegen_flags: <defaults>
</compile_context>

<pallas_src>
import jax
import jax.numpy as jnp
import numpy as np
from jax import lax
from jax.experimental import pallas as pl
from jax.experimental.pallas import tpu as pltpu

# Standard constants used by the spiking `mem_update()` module in these repos.
THRESH = 0.5   # firing threshold
DECAY = 0.25   # membrane decay


def _spike_conv1x1_kernel(x_ref, w_ref, b_ref, o_ref):
    """One grid point = one (batch, hw_tile) slab across ALL T time steps.

    x_ref : (T, C, hw)   input slab (channels on sublanes, pixels on lanes)
    w_ref : (C2, C)      1x1 conv weight (resident)
    b_ref : (C2, 1)      conv bias (resident)
    o_ref : (T, C2, hw)  output slab
    """
    T = x_ref.shape[0]
    hw = x_ref.shape[-1]
    C2 = o_ref.shape[1]

    w = w_ref[...].astype(jnp.float32)
    # Hoist the bias lane-broadcast out of the per-timestep conv: JAX does not
    # CSE broadcast_in_dim, so doing it inside the loop would emit T broadcasts.
    b_full = jnp.broadcast_to(b_ref[...].astype(jnp.float32), (C2, hw))

    def conv(spike):
        # 1x1 conv == channel matmul on the MXU, bias pre-broadcast along lanes.
        return (jnp.dot(w, spike, preferred_element_type=jnp.float32)
                + b_full).astype(o_ref.dtype)

    # t == 0: mem = x[0]
    mem = x_ref[0].astype(jnp.float32)
    spike = (mem > THRESH).astype(jnp.float32)
    o_ref[0] = conv(spike)

    # t >= 1: mem = mem_prev * decay * (1 - spike_prev) + x[t];
    #         spike = H(mem - thresh)
    def step(t, carry):
        mem, spike = carry
        mem = mem * DECAY * (1.0 - spike) + x_ref[t].astype(jnp.float32)
        spike = (mem > THRESH).astype(jnp.float32)
        o_ref[t] = conv(spike)
        return mem, spike

    if T <= 8:
        # Short, fixed trip count: static unroll keeps (mem, spike) in vregs.
        carry = (mem, spike)
        for t in range(1, T):
            carry = step(t, carry)
    else:
        # Long T: rolled loop bounds the live range of the (C, hw) f32 state so
        # it cannot silently spill across a fully unrolled body.
        lax.fori_loop(1, T, step, (mem, spike))


def _round_up(a, m):
    return (a + m - 1) // m * m


def _pick_hw_tile(hw_pad, T, c_pad, c2_pad, itemsize, B, max_block_bytes):
    """Largest lane tile (multiple of 128 dividing hw_pad) fitting the budget,
    preferring tiles that give >= 2 total grid points (v7x dual-TC)."""
    cands = [m for m in range(128, hw_pad + 1, 128) if hw_pad % m == 0]
    if not cands:                     # hw_pad is always a multiple of 128
        cands = [hw_pad]
    cands.sort(reverse=True)          # largest first

    def footprint(tile):
        in_blk = T * c_pad * tile * itemsize       # x block (sublane-padded)
        out_blk = T * c2_pad * tile * itemsize     # o block (sublane-padded)
        # f32 LIF state (mem + spike) and the broadcast bias live across the loop.
        state = (2 * c_pad + c2_pad) * tile * 4
        return 2 * (in_blk + out_blk) + state      # in/out double-buffered

    fits = [c for c in cands if footprint(c) <= max_block_bytes]
    if not fits:
        fits = [cands[-1]]            # smallest 128-multiple tile still lane-dense

    # Prefer a tile that yields >= 2 grid points so both TensorCores work (v7x).
    if B * (hw_pad // fits[0]) < 2:
        multi = [c for c in fits if B * (hw_pad // c) >= 2]
        if multi:
            return multi[0]
    return fits[0]


def spike_conv_without_bn(x, weight, bias, *, s=1, hw_tile=None,
                          max_block_bytes=20 << 20,
                          vmem_limit_bytes=40 << 20):
    """x: (T, B, C, H, W), weight: (C2, C, 1, 1), bias: (C2,)."""
    # Only the module defaults k=1, s=1, groups=1, dilation=1 are supported.
    # TODO(synk): general k/s/groups/dilation spatial conv not implemented in-kernel.
    assert s == 1, "only stride 1 (module default) is implemented"
    T, B, C, H, W = x.shape
    C2, Cin, kh, kw = weight.shape
    assert (Cin, kh, kw) == (C, 1, 1), "only 1x1, groups=1 conv is implemented"

    HW = H * W
    # Free trailing-dim merge: pixels -> lane axis, channels -> sublane axis.
    xr = x.reshape(T, B, C, HW)
    w = weight.reshape(C2, C)
    b = bias.reshape(C2, 1)

    # Pad the pixel axis to a multiple of 128 so every store stays unmasked
    # lane-dense; padded columns are zeros (LIF never spikes there) and are
    # sliced off below.
    hw_pad = _round_up(HW, 128)
    if hw_pad != HW:
        xr = jnp.pad(xr, ((0, 0), (0, 0), (0, 0), (0, hw_pad - HW)))

    # Footprint estimate uses the real element size and sublane-padded channel
    # counts (f32 tiles pad to 8 sublanes, bf16 to 16, int8 to 32).
    itemsize = jnp.dtype(x.dtype).itemsize
    sub = max(8, 32 // itemsize)
    c_pad = _round_up(C, sub)
    c2_pad = _round_up(C2, sub)

    if hw_tile is None:
        hw_tile = _pick_hw_tile(hw_pad, T, c_pad, c2_pad, itemsize, B,
                                max_block_bytes)
    assert hw_pad % hw_tile == 0 and hw_tile % 128 == 0

    out = pl.pallas_call(
        _spike_conv1x1_kernel,
        out_shape=jax.ShapeDtypeStruct((T, B, C2, hw_pad), x.dtype),
        grid_spec=pltpu.PrefetchScalarGridSpec(
            num_scalar_prefetch=0,
            grid=(B, hw_pad // hw_tile),    # fully parallel; T handled in-kernel
            in_specs=[
                pl.BlockSpec((T, None, C, hw_tile), lambda bb, n: (0, bb, 0, n)),
                pl.BlockSpec((C2, C), lambda bb, n: (0, 0)),     # resident weight
                pl.BlockSpec((C2, 1), lambda bb, n: (0, 0)),     # resident bias
            ],
            out_specs=pl.BlockSpec((T, None, C2, hw_tile),
                                   lambda bb, n: (0, bb, 0, n)),
        ),
        compiler_params=pltpu.CompilerParams(
            dimension_semantics=("parallel", "parallel"),
            vmem_limit_bytes=vmem_limit_bytes),
    )(xr, w, b)

    if hw_pad != HW:
        out = out[..., :HW]
    # Free trailing-dim split back to the PyTorch layout.
    return out.reshape(T, B, C2, H, W)


def _reference(x, weight, bias):
    """Pure-JAX reference mirroring the PyTorch forward."""
    T = x.shape[0]
    mem = jnp.zeros_like(x[0])
    spike = jnp.zeros_like(x[0])
    outs = []
    for i in range(T):
        mem = x[0] if i == 0 else mem * DECAY * (1.0 - spike) + x[i]
        spike = (mem > THRESH).astype(x.dtype)
        outs.append(spike)
    spk = jnp.stack(outs, 0)                              # (T,B,C,H,W) in {0,1}
    w = weight.reshape(weight.shape[0], weight.shape[1])  # (C2, C), k=1
    y = jnp.einsum('tbchw,oc->tbohw', spk, w) + bias[None, None, :, None, None]
    return y


if __name__ == "__main__":
    key = jax.random.PRNGKey(0)
    T, B, C, C2, H, W = 4, 2, 4, 8, 16, 16
    k1, k2, k3 = jax.random.split(key, 3)
    x = jax.random.normal(k1, (T, B, C, H, W), dtype=jnp.float32)
    # Deterministic synthetic conv parameters (Conv2d(c1=C, c2=C2, k=1, bias=True)).
    weight = jax.random.normal(k2, (C2, C, 1, 1), dtype=jnp.float32) / np.sqrt(C)
    bias = 0.1 * jax.random.normal(k3, (C2,), dtype=jnp.float32)

    y = spike_conv_without_bn(x, weight, bias)
    y = jax.block_until_ready(y)

    y_ref = _reference(x, weight, bias)
    np.testing.assert_allclose(np.asarray(y), np.asarray(y_ref), rtol=1e-5, atol=1e-5)
    print("KERNEL_OK")
</pallas_src>

<mosaic_0001>
module attributes {stable_mosaic.version = 11 : i64} {
  func.func @_spike_conv1x1_kernel(%arg0: i32, %arg1: i32, %arg2: memref<4x1x4x256xf32, #tpu.memory_space<vmem>>, %arg3: memref<8x4xf32, #tpu.memory_space<vmem>>, %arg4: memref<8x1xf32, #tpu.memory_space<vmem>>, %arg5: memref<4x1x8x256xf32, #tpu.memory_space<vmem>>) attributes {dimension_semantics = [#tpu.dimension_semantics<parallel>, #tpu.dimension_semantics<parallel>], iteration_bounds = array<i64: 2, 1>, scalar_prefetch = 0 : i64, scratch_operands = 0 : i64, tpu.core_type = #tpu.core_type<tc>, window_params = [{transform_indices = @transform_0, window_bounds = array<i64: 4, 1, 4, 256>}, {pipeline_mode = #tpu.pipeline_mode<synchronous>, transform_indices = @transform_1, window_bounds = array<i64: 8, 4>}, {pipeline_mode = #tpu.pipeline_mode<synchronous>, transform_indices = @transform_2, window_bounds = array<i64: 8, 1>}, {transform_indices = @transform_3, window_bounds = array<i64: 4, 1, 8, 256>}]} {
    %c0 = arith.constant 0 : index
    %c0_0 = arith.constant 0 : index
    %0 = vector.load %arg3[%c0, %c0_0] : memref<8x4xf32, #tpu.memory_space<vmem>>, vector<8x4xf32>
    %c0_1 = arith.constant 0 : index
    %c0_2 = arith.constant 0 : index
    %1 = vector.load %arg4[%c0_1, %c0_2] : memref<8x1xf32, #tpu.memory_space<vmem>>, vector<8x1xf32>
    %2 = vector.shape_cast %1 : vector<8x1xf32> to vector<8x1xf32>
    %3 = vector.broadcast %2 : vector<8x1xf32> to vector<8x256xf32>
    %c0_3 = arith.constant 0 : index
    %c0_4 = arith.constant 0 : index
    %c0_5 = arith.constant 0 : index
    %c0_6 = arith.constant 0 : index
    %4 = vector.load %arg2[%c0_3, %c0_4, %c0_5, %c0_6] : memref<4x1x4x256xf32, #tpu.memory_space<vmem>>, vector<1x1x4x256xf32>
    %5 = vector.shape_cast %4 : vector<1x1x4x256xf32> to vector<4x256xf32>
    %cst = arith.constant 5.000000e-01 : f32
    %6 = vector.broadcast %cst : f32 to vector<4x256xf32>
    %7 = arith.cmpf ogt, %5, %6 : vector<4x256xf32>
    %8 = arith.extui %7 : vector<4x256xi1> to vector<4x256xi32>
    %9 = arith.sitofp %8 : vector<4x256xi32> to vector<4x256xf32>
    %cst_7 = arith.constant dense<0.000000e+00> : vector<8x256xf32>
    %10 = tpu.matmul %0, %9, %cst_7 {dimension_numbers = #tpu.dot_dimension_numbers<[1], [0], [0], [1], [0, 0, 1, 1], [], []>} : vector<8x4xf32>, vector<4x256xf32>, vector<8x256xf32> -> vector<8x256xf32>
    %11 = arith.addf %10, %3 : vector<8x256xf32>
    %c0_8 = arith.constant 0 : index
    %c0_9 = arith.constant 0 : index
    %c0_10 = arith.constant 0 : index
    %c0_11 = arith.constant 0 : index
    %12 = vector.load %arg5[%c0_8, %c0_9, %c0_10, %c0_11] : memref<4x1x8x256xf32, #tpu.memory_space<vmem>>, vector<1x1x8x256xf32>
    %13 = vector.shape_cast %12 : vector<1x1x8x256xf32> to vector<8x256xf32>
    %14 = vector.shape_cast %11 : vector<8x256xf32> to vector<1x1x8x256xf32>
    tpu.vector_store %arg5[%c0_8, %c0_9, %c0_10, %c0_11], %14 {strides = array<i32>} : memref<4x1x8x256xf32, #tpu.memory_space<vmem>>, vector<1x1x8x256xf32>,
    %cst_12 = arith.constant 2.500000e-01 : f32
    %15 = vector.broadcast %cst_12 : f32 to vector<4x256xf32>
    %16 = arith.mulf %5, %15 : vector<4x256xf32>
    %cst_13 = arith.constant 1.000000e+00 : f32
    %17 = vector.broadcast %cst_13 : f32 to vector<4x256xf32>
    %18 = arith.subf %17, %9 : vector<4x256xf32>
    %19 = arith.mulf %16, %18 : vector<4x256xf32>
    %c1 = arith.constant 1 : index
    %c0_14 = arith.constant 0 : index
    %c0_15 = arith.constant 0 : index
    %c0_16 = arith.constant 0 : index
    %20 = vector.load %arg2[%c1, %c0_14, %c0_15, %c0_16] : memref<4x1x4x256xf32, #tpu.memory_space<vmem>>, vector<1x1x4x256xf32>
    %21 = vector.shape_cast %20 : vector<1x1x4x256xf32> to vector<4x256xf32>
    %22 = arith.addf %19, %21 : vector<4x256xf32>
    %cst_17 = arith.constant 5.000000e-01 : f32
    %23 = vector.broadcast %cst_17 : f32 to vector<4x256xf32>
    %24 = arith.cmpf ogt, %22, %23 : vector<4x256xf32>
    %25 = arith.extui %24 : vector<4x256xi1> to vector<4x256xi32>
    %26 = arith.sitofp %25 : vector<4x256xi32> to vector<4x256xf32>
    %cst_18 = arith.constant dense<0.000000e+00> : vector<8x256xf32>
    %27 = tpu.matmul %0, %26, %cst_18 {dimension_numbers = #tpu.dot_dimension_numbers<[1], [0], [0], [1], [0, 0, 1, 1], [], []>} : vector<8x4xf32>, vector<4x256xf32>, vector<8x256xf32> -> vector<8x256xf32>
    %28 = arith.addf %27, %3 : vector<8x256xf32>
    %c1_19 = arith.constant 1 : index
    %c0_20 = arith.constant 0 : index
    %c0_21 = arith.constant 0 : index
    %c0_22 = arith.constant 0 : index
    %29 = vector.load %arg5[%c1_19, %c0_20, %c0_21, %c0_22] : memref<4x1x8x256xf32, #tpu.memory_space<vmem>>, vector<1x1x8x256xf32>
    %30 = vector.shape_cast %29 : vector<1x1x8x256xf32> to vector<8x256xf32>
    %31 = vector.shape_cast %28 : vector<8x256xf32> to vector<1x1x8x256xf32>
    tpu.vector_store %arg5[%c1_19, %c0_20, %c0_21, %c0_22], %31 {strides = array<i32>} : memref<4x1x8x256xf32, #tpu.memory_space<vmem>>, vector<1x1x8x256xf32>,
    %cst_23 = arith.constant 2.500000e-01 : f32
    %32 = vector.broadcast %cst_23 : f32 to vector<4x256xf32>
    %33 = arith.mulf %22, %32 : vector<4x256xf32>
    %cst_24 = arith.constant 1.000000e+00 : f32
    %34 = vector.broadcast %cst_24 : f32 to vector<4x256xf32>
    %35 = arith.subf %34, %26 : vector<4x256xf32>
    %36 = arith.mulf %33, %35 : vector<4x256xf32>
    %c2 = arith.constant 2 : index
    %c0_25 = arith.constant 0 : index
    %c0_26 = arith.constant 0 : index
    %c0_27 = arith.constant 0 : index
    %37 = vector.load %arg2[%c2, %c0_25, %c0_26, %c0_27] : memref<4x1x4x256xf32, #tpu.memory_space<vmem>>, vector<1x1x4x256xf32>
    %38 = vector.shape_cast %37 : vector<1x1x4x256xf32> to vector<4x256xf32>
    %39 = arith.addf %36, %38 : vector<4x256xf32>
    %cst_28 = arith.constant 5.000000e-01 : f32
    %40 = vector.broadcast %cst_28 : f32 to vector<4x256xf32>
    %41 = arith.cmpf ogt, %39, %40 : vector<4x256xf32>
    %42 = arith.extui %41 : vector<4x256xi1> to vector<4x256xi32>
    %43 = arith.sitofp %42 : vector<4x256xi32> to vector<4x256xf32>
    %cst_29 = arith.constant dense<0.000000e+00> : vector<8x256xf32>
    %44 = tpu.matmul %0, %43, %cst_29 {dimension_numbers = #tpu.dot_dimension_numbers<[1], [0], [0], [1], [0, 0, 1, 1], [], []>} : vector<8x4xf32>, vector<4x256xf32>, vector<8x256xf32> -> vector<8x256xf32>
    %45 = arith.addf %44, %3 : vector<8x256xf32>
    %c2_30 = arith.constant 2 : index
    %c0_31 = arith.constant 0 : index
    %c0_32 = arith.constant 0 : index
    %c0_33 = arith.constant 0 : index
    %46 = vector.load %arg5[%c2_30, %c0_31, %c0_32, %c0_33] : memref<4x1x8x256xf32, #tpu.memory_space<vmem>>, vector<1x1x8x256xf32>
    %47 = vector.shape_cast %46 : vector<1x1x8x256xf32> to vector<8x256xf32>
    %48 = vector.shape_cast %45 : vector<8x256xf32> to vector<1x1x8x256xf32>
    tpu.vector_store %arg5[%c2_30, %c0_31, %c0_32, %c0_33], %48 {strides = array<i32>} : memref<4x1x8x256xf32, #tpu.memory_space<vmem>>, vector<1x1x8x256xf32>,
    %cst_34 = arith.constant 2.500000e-01 : f32
    %49 = vector.broadcast %cst_34 : f32 to vector<4x256xf32>
    %50 = arith.mulf %39, %49 : vector<4x256xf32>
    %cst_35 = arith.constant 1.000000e+00 : f32
    %51 = vector.broadcast %cst_35 : f32 to vector<4x256xf32>
    %52 = arith.subf %51, %43 : vector<4x256xf32>
    %53 = arith.mulf %50, %52 : vector<4x256xf32>
    %c3 = arith.constant 3 : index
    %c0_36 = arith.constant 0 : index
    %c0_37 = arith.constant 0 : index
    %c0_38 = arith.constant 0 : index
    %54 = vector.load %arg2[%c3, %c0_36, %c0_37, %c0_38] : memref<4x1x4x256xf32, #tpu.memory_space<vmem>>, vector<1x1x4x256xf32>
    %55 = vector.shape_cast %54 : vector<1x1x4x256xf32> to vector<4x256xf32>
    %56 = arith.addf %53, %55 : vector<4x256xf32>
    %cst_39 = arith.constant 5.000000e-01 : f32
    %57 = vector.broadcast %cst_39 : f32 to vector<4x256xf32>
    %58 = arith.cmpf ogt, %56, %57 : vector<4x256xf32>
    %59 = arith.extui %58 : vector<4x256xi1> to vector<4x256xi32>
    %60 = arith.sitofp %59 : vector<4x256xi32> to vector<4x256xf32>
    %cst_40 = arith.constant dense<0.000000e+00> : vector<8x256xf32>
    %61 = tpu.matmul %0, %60, %cst_40 {dimension_numbers = #tpu.dot_dimension_numbers<[1], [0], [0], [1], [0, 0, 1, 1], [], []>} : vector<8x4xf32>, vector<4x256xf32>, vector<8x256xf32> -> vector<8x256xf32>
    %62 = arith.addf %61, %3 : vector<8x256xf32>
    %c3_41 = arith.constant 3 : index
    %c0_42 = arith.constant 0 : index
    %c0_43 = arith.constant 0 : index
    %c0_44 = arith.constant 0 : index
    %63 = vector.load %arg5[%c3_41, %c0_42, %c0_43, %c0_44] : memref<4x1x8x256xf32, #tpu.memory_space<vmem>>, vector<1x1x8x256xf32>
    %64 = vector.shape_cast %63 : vector<1x1x8x256xf32> to vector<8x256xf32>
    %65 = vector.shape_cast %62 : vector<8x256xf32> to vector<1x1x8x256xf32>
    tpu.vector_store %arg5[%c3_41, %c0_42, %c0_43, %c0_44], %65 {strides = array<i32>} : memref<4x1x8x256xf32, #tpu.memory_space<vmem>>, vector<1x1x8x256xf32>,
    return
  }
  func.func @transform_0(%arg0: i32, %arg1: i32) -> (i32, i32, i32, i32) {
    %c0_i32 = arith.constant 0 : i32
    %c0_i32_0 = arith.constant 0 : i32
    %c0_i32_1 = arith.constant 0 : i32
    return %c0_i32, %arg0, %c0_i32_0, %arg1 : i32, i32, i32, i32
  }
  func.func @transform_1(%arg0: i32, %arg1: i32) -> (i32, i32) {
    %c0_i32 = arith.constant 0 : i32
    %c0_i32_0 = arith.constant 0 : i32
    %c0_i32_1 = arith.constant 0 : i32
    return %c0_i32, %c0_i32_0 : i32, i32
  }
  func.func @transform_2(%arg0: i32, %arg1: i32) -> (i32, i32) {
    %c0_i32 = arith.constant 0 : i32
    %c0_i32_0 = arith.constant 0 : i32
    %c0_i32_1 = arith.constant 0 : i32
    return %c0_i32, %c0_i32_0 : i32, i32
  }
  func.func @transform_3(%arg0: i32, %arg1: i32) -> (i32, i32, i32, i32) {
    %c0_i32 = arith.constant 0 : i32
    %c0_i32_0 = arith.constant 0 : i32
    %c0_i32_1 = arith.constant 0 : i32
    return %c0_i32, %arg0, %c0_i32_0, %arg1 : i32, i32, i32, i32
  }
}

</mosaic_0001>

<bundles_post_ra>
// kernel: tpu_custom_call.1
= control target key start
LH: loop header
LB: loop body
LE: loop exit
PB: predicated region body
PF: predicated region fallthrough
CT: control target
= control target key end

     0   :  { %8 = vsyncpa [#allocation3], 0  ;;  %s970_s0 = inlined_call_operand.hbm [shape: f32[4,2,4,256], index: 0, kind: input, shape index: {}]   ;;  %s971_s1 = inlined_call_operand.vmem [shape: f32[8,4], index: 1, kind: input, shape index: {}]   ;;  %s972_s2 = inlined_call_operand.vmem [shape: f32[8,1], index: 2, kind: input, shape index: {}]   ;;  %s973_s3 = inlined_call_operand.hbm [shape: f32[4,2,8,256], index: 3, kind: output, shape index: {}]  }
   0x1   :  { %10 = vsyncpa [#allocation3 + $0x1], 0 }
   0x2   :  { %11 = vsyncpa [#allocation4], 0 }
   0x3   :  { %13 = vsyncpa [#allocation4 + $0x1], 0  ;;  %s821_s12 = smov 0   ;;  %s823_s13 = smov 0  }
   0x4   :  { %s825_s14 = smov 0   ;;  %s827_s15 = smov 0  }
   0x5   :  { %s829_s16 = smov 0   ;;  %s831_s17 = smov 0  }
   0x6 LB: > { %s562_s18 = sadd.s32 4294967295, %s791_s17   ;;  %s563_s19 = sadd.s32 4294967294, %s791_s17   ;;  %s791_s17 = sphi %s831_s17, %s19_s17   ;;  %s787_s16 = sphi %s829_s16, %s982_s16   ;;  %s783_s15 = sphi %s827_s15, %s981_s15   ;;  %s779_s14 = sphi %s825_s14, %s980_s14   ;;  %s775_s13 = sphi %s823_s13, %s979_s13   ;;  %s771_s12 = sphi %s821_s12, %s978_s12  }
   0x7   : > { %s31_s20 = sadd.s32 1, %s787_s16  ;;  %s40_s21 = sadd.s32 1, %s779_s14 }
   0x8   : > { %p33_p0 = scmp.ge.s32.totalorder %s31_s20, 2  ;;  %p47_p1 = scmp.ne.s32.totalorder %s779_s14, %s775_s13 }
   0x9   : > { %p48_p2 = scmp.eq.s32.totalorder %s791_s17, 0  ;;  %p53_p3 = scmp.ne.s32.totalorder %s775_s13, %s771_s12 }
   0xa   : > { %s984_s20 = smov (%p33_p0, %s31_s20), 0  ;;  %p54_p5 = scmp.eq.s32.totalorder %s562_s18, 0 }
   0xb   : > { %p862_p4 = por %p48_p2, %p47_p1  ;;  %s35_s23 = ssub.s32 %s787_s16, %s984_s20 }
   0xc   : > { %p121_p6 = scmp.eq.s32.totalorder %s562_s18, 1  ;;  %p38_p7 = scmp.eq.s32.totalorder %s35_s23, 0 }
   0xd   : > { %p868_p8 = por %p54_p5, %p53_p3  ;;  %p127_p10 = scmp.eq.s32.totalorder %s563_s19, 1 }
   0xe   : > { %p872_p9 = por %p121_p6, %p47_p1  ;;  %p565_p12 = scmp.ge.s32.totalorder %s791_s17, 2 }
   0xf   : > { %s877_s26 = scalar_select %p38_p7, %s779_s14, %s40_s21  }
  0x10   : > { %p879_p11 = por %p127_p10, %p53_p3  ;;  %p620_p13 = scmp.lt.s32.totalorder %s791_s17, 2 }
  0x11   : > { %s153_s28 = sand.u32 1, %s779_s14   ;;  %s606_s30 = sshll.u32 %s787_s16, 3 }
  0x12   : > { %s566_s29 = sshll.u32 %s153_s28, 5  ;;  %s164_s6 = scalar_lea.hbm %s970_s0, %s606_s30 }
  0x13   : > { %s157_s7 = scalar_lea.vmem [#allocation2], %s566_s29  ;;  %s165_s9 = sshll.u32 %s164_s6, 4  ;;  %s166_s9 = int_to_ptr.hbm [resolvable:$true] %s165_s9 }
  0x14   : > { %s167_s8 = sshll.u32 %s157_s7, 4  ;;  %p613_p0 = pnand %p620_p13, %p862_p4  ;;  %s168_s8 = int_to_ptr.vmem [resolvable:$true] %s167_s8 }
  0x15   : > { %s154_s10 = scalar_lea.sflag [#allocation3], %s153_s28  ;;  %s793_s11 = smov 256  }
  0x16   : > { %s794_s18 = smov 128   ;;  %s795_s19 = smov 8  }
  0x17   : > { %615 = dma.hbm_to_vmem [thread:$0]  (!%p613_p0), %s166_s9, 512, %s168_s8, %s154_s10, %s793_s11, %s794_s18, %s795_s19  }
  0x18   : > { %p569_p1 = scmp.ge.s32.totalorder %s791_s17, 1  ;;  %p175_p2 = scmp.lt.s32.totalorder %s791_s17, 3 }
  0x1a   : > { %p176_p3 = pnand %p569_p1, %p175_p2 }
  0x1b   : > { %s895_s21 = sand.u32 (!%p176_p3), 1, %s775_s13  }
  0x1c   : > { %179 = sbr.rel (%p176_p3) target bundleno = 213 (0xd5), region = 32  ;;  %s570_s23 = sshll.u32 (!%p176_p3), %s895_s21, 5 }
  0x1d   : > { %s182_s29 = scalar_lea.sflag (!%p176_p3), [#allocation3], %s895_s21  ;;  %s899_s30 = scalar_lea.vmem (!%p176_p3), [#allocation2], %s570_s23 }
  0x21   : > { %762 = dma.done.wait (%p868_p8), %s182_s29, 512  }
  0x22   : > { %764 = vsyncadd (%p868_p8), %s182_s29, 4294966784  ;;  %v218_v0 = vld [vmem:[%s899_s30] sm:$0xff]  ;;  %v796_v2 = vmov 0.0   ;;  %v577_v5 = vld [vmem:[%s899_s30 + $0x8] sm:$0xff]  ;;  %v797_v9 = vmov 0   ;;  %vm230_vm1 = vcmask 1043456  }
  0x23   : > { %vm219_vm0 = vcmp.gt.f32.partialorder %v218_v0, 0.5  ;;  %v277_v1 = vmul.f32 0.25, %v218_v0  ;;  %v212_v8 = vld [vmem:[%s972_s2] sm:$0xff]  ;;  %678 = vset.pattern.permute.xlu0 %v797_v9  ;;  %vm226_vm3 = vcmask 31744   ;;  %v585_v16 = vld [vmem:[%s899_s30 + $0x10] sm:$0xff]  ;;  %s571_s5 = sshll.u32 %s895_s21, 6 }
  0x24   : > { %v572_v3 = vsel %vm219_vm0, 1.0, %v796_v2  ;;  %215 = vperm.xlu0 %678, %v212_v8   ;;  %v211_v14 = vld [vmem:[%s971_s1] sm:$0xff]  ;;  %s208_s6 = scalar_lea.vmem [#allocation5], %s571_s5  ;;  %s607_s7 = sshll.u32 %s783_s15, 4 }
  0x25   : > { %223 = vst [vmem:[#allocation1] ss:$2 sm:$0xff] %v572_v3  ;;  %v278_v4 = vsub.f32 1.0, %v572_v3  ;;  %v593_v24 = vld [vmem:[%s899_s30 + $0x18] sm:$0xff]  ;;  %s471_s10 = scalar_lea.hbm %s973_s3, %s607_s7  ;;  %s472_s11 = sshll.u32 %s208_s6, 4  ;;  %s473_s11 = int_to_ptr.vmem [resolvable:$true] %s472_s11 }
  0x26   : > { %s474_s18 = sshll.u32 %s471_s10, 4  ;;  %s458_s19 = scalar_lea.sflag [#allocation4], %s895_s21  ;;  %s475_s18 = int_to_ptr.hbm [resolvable:$true] %s474_s18 }
  0x27   : > { %v279_v6 = vmul.f32 %v278_v4, %v277_v1  ;;  %s723_s23 = sshra.s32 %s475_s18, 4  ;;  %s729_s22 = scalar_lea.hbm %s973_s3, 128  ;;  %s724_s23 = int_to_ptr.hbm [resolvable:$true] %s723_s23 }
  0x28   : > { %s725_s29 = scalar_lea.hbm %s724_s23, 64  ;;  %p730_p7 = scmp.lt.s32.totalorder %s724_s23, %s973_s3 }
  0x29   : > { %v282_v7 = vadd.f32 %v577_v5, %v279_v6  ;;  %p726_p4 = scmp.ne.s32.totalorder %s724_s23, %s725_s29  ;;  %p731_p8 = scmp.lt.s32.totalorder %s729_s22, %s725_s29 }
  0x2b   : > { %vm283_vm2 = vcmp.gt.f32.partialorder %v282_v7, 0.5  ;;  %v337_v10 = vmul.f32 0.25, %v282_v7  ;;  %p727_p5 = pnand %p726_p4, %p872_p9  ;;  %p732_p10 = por %p731_p8, %p730_p7 }
  0x2c   : > { %v224_v11 = vld.sshfl [vmem:[#allocation1] sm:$0xff pattern:$0x75316420]  ;;  %v225_v12 = vld.sshfl [vmem:[#allocation1 + $0x8] sm:$0xff pattern:$0x75316420] }
  0x2d   : > { %v578_v13 = vsel %vm283_vm2, 1.0, %v796_v2  ;;  %573 = vmatpush.msk.msra.mxu0 %vm230_vm1, %v224_v11  ;;  %575 = vmatpush.msk.msra.mxu1 %vm230_vm1, %v225_v12  ;;  %p728_p6 = pneg %p727_p5 }
  0x2e   : > { %287 = vst [vmem:[#allocation1] ss:$2 sm:$0xff] %v578_v13  ;;  %v338_v15 = vsub.f32 1.0, %v578_v13  ;;  %574 = vmatmul.msk.f32.vlgmr.msra.gmra.mxu0 %vm226_vm3, %v211_v14  ;;  %576 = vmatmul.msk.f32.vlgmr.msra.gmra.mxu1 %vm226_vm3, %v211_v14 }
  0x2f   : > { %p733_p13 = pnand %p732_p10, %p728_p6 }
  0x30   : > { %v339_v17 = vmul.f32 %v338_v15, %v337_v10 }
  0x32   : > { %v342_v18 = vadd.f32 %v585_v16, %v339_v17 }
  0x34   : > { %vm343_vm4 = vcmp.gt.f32.partialorder %v342_v18, 0.5  ;;  %v397_v19 = vmul.f32 0.25, %v342_v18 }
  0x35   : > { %v288_v20 = vld.sshfl [vmem:[#allocation1] sm:$0xff pattern:$0x75316420]  ;;  %v289_v21 = vld.sshfl [vmem:[#allocation1 + $0x8] sm:$0xff pattern:$0x75316420] }
  0x36   : > { %579 = vmatpush.msk.msra.mxu2 %vm230_vm1, %v288_v20  ;;  %581 = vmatpush.msk.msra.mxu3 %vm230_vm1, %v289_v21  ;;  %v586_v22 = vsel %vm343_vm4, 1.0, %v796_v2 }
  0x37   : > { %347 = vst [vmem:[#allocation1] ss:$2 sm:$0xff] %v586_v22  ;;  %v398_v23 = vsub.f32 1.0, %v586_v22  ;;  %580 = vmatmul.msk.f32.vlgmr.msra.gmra.mxu2 %vm226_vm3, %v211_v14  ;;  %582 = vmatmul.msk.f32.vlgmr.msra.gmra.mxu3 %vm226_vm3, %v211_v14 }
  0x39   : > { %v399_v25 = vmul.f32 %v398_v23, %v397_v19 }
  0x3b   : > { %v402_v26 = vadd.f32 %v593_v24, %v399_v25 }
  0x3d   : > { %vm403_vm5 = vcmp.gt.f32.partialorder %v402_v26, 0.5 }
  0x3e   : > { %v348_v27 = vld.sshfl [vmem:[#allocation1] sm:$0xff pattern:$0x75316420]  ;;  %v349_v28 = vld.sshfl [vmem:[#allocation1 + $0x8] sm:$0xff pattern:$0x75316420] }
  0x3f   : > { %v594_v29 = vsel %vm403_vm5, 1.0, %v796_v2  ;;  %587 = vmatpush.msk.msrb.mxu0 %vm230_vm1, %v348_v27  ;;  %589 = vmatpush.msk.msrb.mxu1 %vm230_vm1, %v349_v28 }
  0x40   : > { %407 = vst [vmem:[#allocation1] ss:$2 sm:$0xff] %v594_v29  ;;  %588 = vmatmul.msk.f32.vlgmr.msrb.gmra.mxu0 %vm226_vm3, %v211_v14  ;;  %590 = vmatmul.msk.f32.vlgmr.msrb.gmra.mxu1 %vm226_vm3, %v211_v14 }
  0x47   : > { %v408_v30 = vld.sshfl [vmem:[#allocation1] sm:$0xff pattern:$0x75316420]  ;;  %v409_v31 = vld.sshfl [vmem:[#allocation1 + $0x8] sm:$0xff pattern:$0x75316420] }
  0x48   : > { %595 = vmatpush.msk.msrb.mxu2 %vm230_vm1, %v408_v30  ;;  %597 = vmatpush.msk.msrb.mxu3 %vm230_vm1, %v409_v31 }
  0x49   : > { %596 = vmatmul.msk.f32.vlgmr.msrb.gmra.mxu2 %vm226_vm3, %v211_v14  ;;  %598 = vmatmul.msk.f32.vlgmr.msrb.gmra.mxu3 %vm226_vm3, %v211_v14 }
  0x96   : > { %v216_v32 = vpop.permute.xlu0 %215 }
  0xab   : > { %v252_v33 = vpop.f32.mrf.mxu0  ;;  %v272_v34 = vpop.f32.mrf.mxu1 }
  0xac   : > { %v253_v35 = vadd.f32 %v252_v33, %v216_v32  ;;  %v273_v36 = vadd.f32 %v272_v34, %v216_v32 }
  0xae   : > { %275 = vst [vmem:[%s208_s6] sm:$0xff] %v253_v35 }
  0xaf   : > { %276 = vst [vmem:[%s208_s6 + $0x8] sm:$0xff] %v273_v36 }
  0xba   : > { %v311_v37 = vpop.f32.mrf.mxu2  ;;  %v331_v38 = vpop.f32.mrf.mxu3 }
  0xbb   : > { %v312_v39 = vadd.f32 %v311_v37, %v216_v32  ;;  %v332_v40 = vadd.f32 %v331_v38, %v216_v32 }
  0xbd   : > { %583 = vst [vmem:[%s208_s6 + $0x10] sm:$0xff] %v312_v39  ;;  %v371_v41 = vpop.f32.mrf.mxu0  ;;  %v391_v42 = vpop.f32.mrf.mxu1 }
  0xbe   : > { %584 = vst [vmem:[%s208_s6 + $0x18] sm:$0xff] %v332_v40  ;;  %v372_v43 = vadd.f32 %v371_v41, %v216_v32  ;;  %v392_v44 = vadd.f32 %v391_v42, %v216_v32 }
  0xc0   : > { %591 = vst [vmem:[%s208_s6 + $0x20] sm:$0xff] %v372_v43 }
  0xc1   : > { %592 = vst [vmem:[%s208_s6 + $0x28] sm:$0xff] %v392_v44 }
  0xcc   : > { %v431_v45 = vpop.f32.mrf.mxu2  ;;  %v451_v46 = vpop.f32.mrf.mxu3 }
  0xcd   : > { %v432_v47 = vadd.f32 %v431_v45, %v216_v32  ;;  %v452_v48 = vadd.f32 %v451_v46, %v216_v32 }
  0xcf   : > { %599 = vst [vmem:[%s208_s6 + $0x30] sm:$0xff] %v432_v47 }
  0xd0   : > { %600 = vst [vmem:[%s208_s6 + $0x38] sm:$0xff] %v452_v48 }
  0xd1   : > { %736 = shalt.err (!%p733_p13)
}
  0xd2   : > { %s798_s21 = smov 256   ;;  %s799_s4 = smov 512  }
  0xd3   : > { %s800_s5 = smov 16  }
  0xd4   : > { %610 = dma.vmem_to_hbm [thread:$0]  (%p872_p9), %s473_s11, 1024, %s475_s18, %s458_s19, %s798_s21, %s799_s4, %s800_s5  }
  0xd5 PF: > { %s489_s6 = sand.u32 1, %s771_s12   ;;  %p617_p0 = pnand %p565_p12, %p879_p11 }
  0xd6   : > { %s490_s7 = scalar_lea.sflag [#allocation4], %s489_s6 }
  0xd7   : > { %p618_p1 = pneg %p617_p0 }
  0xd9   : > { %766 = dma.done.wait (%p618_p1), %s490_s7, 1024  }
  0xda   : > { %768 = vsyncadd (%p618_p1), %s490_s7, 4294966272  ;;  %s19_s17 = sadd.s32 1, %s791_s17   ;;  %s978_s12 = smov %s775_s13 }
  0xdb   : > { %p16_p2 = scmp.ge.s32.totalorder %s19_s17, 4   ;;  %s979_s13 = smov %s779_s14 }
  0xdc   : > { %s980_s14 = smov %s877_s26  ;;  %s981_s15 = smov %s787_s16 }
  0xdd   : > { %s982_s16 = smov %s984_s20  ;;  %18 = sbr.rel (!%p16_p2) target bundleno = 6 (0x6), region = 83 }
  0xe2   :  { %496 = vsyncpa [#allocation3], 1 }
  0xe3   :  { %498 = vsyncpa [#allocation3 + $0x1], 1 }
  0xe4   :  { %499 = vsyncpa [#allocation4], 1 }
  0xe5   :  { %501 = vsyncpa [#allocation4 + $0x1], 1 }

</bundles_post_ra>
